<compile_context>
chip_gen: v6e
topology: v6e:2x2x1
jax: 0.10.0
libtpu: 0.0.40
codegen_flags: <defaults>
</compile_context>

<pallas_src>
import functools

import jax
import jax.numpy as jnp
from jax.experimental import pallas as pl
from jax.experimental.pallas import tpu as pltpu

LANE = 128


def _round_up(n: int, m: int) -> int:
    return ((n + m - 1) // m) * m


def _ae_kernel(x_ref,
               we1_ref, be1_ref, we2_ref, be2_ref, we3_ref, be3_ref,
               wd1_ref, bd1_ref, wd2_ref, bd2_ref, wd3_ref, bd3_ref,
               z_ref, xhat_ref):
    """Fused AE forward on one batch tile: 6 x (matmul + bias + sigmoid)."""

    def fc_sigmoid(h_f32, w_ref, b_ref):
        # MXU in the weight dtype (bf16), f32 accumulate.
        y = jnp.dot(h_f32.astype(w_ref.dtype), w_ref[...],
                    preferred_element_type=jnp.float32)
        y = y + b_ref[...]           # (1, out) bias broadcasts over batch rows
        return jax.nn.sigmoid(y)     # VPU/EUP in f32 (portable to v5e)

    h = x_ref[...].astype(jnp.float32)

    # encoder
    h = fc_sigmoid(h, we1_ref, be1_ref)   # D_pad -> 256
    h = fc_sigmoid(h, we2_ref, be2_ref)   # 256   -> 64
    z = fc_sigmoid(h, we3_ref, be3_ref)   # 64    -> L_pad (lane-dense)
    z_ref[...] = z.astype(z_ref.dtype)

    # decoder (padded z columns hit zero weight rows -> no effect on the math)
    h = fc_sigmoid(z, wd1_ref, bd1_ref)   # L_pad -> 64
    h = fc_sigmoid(h, wd2_ref, bd2_ref)   # 64    -> 256
    h = fc_sigmoid(h, wd3_ref, bd3_ref)   # 256   -> D_pad (lane-dense)
    xhat_ref[...] = h.astype(xhat_ref.dtype)


def init_ae_params(key, original_dim: int, latent_dim: int):
    """Deterministic PyTorch-Linear-style init. Weights stored as [in, out]."""
    dims = [(original_dim, 256), (256, 64), (64, latent_dim),     # encoder
            (latent_dim, 64), (64, 256), (256, original_dim)]     # decoder
    params = []
    for (fan_in, fan_out) in dims:
        key, kw, kb = jax.random.split(key, 3)
        bound = 1.0 / jnp.sqrt(float(fan_in))
        w = jax.random.uniform(kw, (fan_in, fan_out), jnp.float32, -bound, bound)
        b = jax.random.uniform(kb, (1, fan_out), jnp.float32, -bound, bound)
        params.append((w, b))
    return params


def _prep_padded_params(params, param_dtype):
    """Zero-pad I/O-facing dims to multiples of 128 and cast weights for the MXU."""
    (w1, b1), (w2, b2), (w3, b3), (w4, b4), (w5, b5), (w6, b6) = params
    D = w1.shape[0]
    L = w3.shape[1]
    D_pad = _round_up(D, LANE)
    L_pad = _round_up(L, LANE)

    def pad_to(a, shape):
        return jnp.pad(a, [(0, s - d) for d, s in zip(a.shape, shape)])

    w1p = pad_to(w1, (D_pad, 256))                                  # zero input rows
    w3p = pad_to(w3, (64, L_pad))
    b3p = pad_to(b3, (1, L_pad))                                    # zero latent cols
    w4p = pad_to(w4, (L_pad, 64))                                   # zero latent rows
    w6p = pad_to(w6, (256, D_pad))
    b6p = pad_to(b6, (1, D_pad))                                    # zero output cols

    flat = [w1p, b1, w2, b2, w3p, b3p, w4p, b4, w5, b5, w6p, b6p]
    out = []
    for i, t in enumerate(flat):
        if i % 2 == 0:                      # weights -> bf16 for MXU-native matmuls
            out.append(t.astype(param_dtype))
        else:                               # biases stay f32 (post-matmul add)
            out.append(t.astype(jnp.float32))
    return out, D_pad, L_pad


@functools.partial(jax.jit, static_argnames=("batch_tile", "param_dtype"))
def ae_forward(x, params, *, batch_tile=256, param_dtype=jnp.bfloat16):
    B, D = x.shape
    L = params[2][0].shape[1]

    flat_params, D_pad, L_pad = _prep_padded_params(params, param_dtype)

    # Clamp the tile for tiny batches (single grid step), keep it a multiple of 8.
    bt = min(batch_tile, max(8, _round_up(B, 8)))
    bt = max(8, (bt // 8) * 8)
    B_pad = _round_up(B, bt)

    # Input is always fed to the kernel as f32 and lane-padded to D_pad (zeros hit
    # zero-padded weight rows, so the result is unchanged).
    x_p = x.astype(jnp.float32)
    if (B_pad, D_pad) != (B, D):
        x_p = jnp.pad(x_p, ((0, B_pad - B), (0, D_pad - D)))

    grid = (B_pad // bt,)

    # One block per whole parameter array (small; constant block index -> DMA'd once).
    # Explicit default-arg binding avoids Python's late-binding-in-comprehension trap.
    param_specs = [
        pl.BlockSpec(p.shape, lambda i, nd=p.ndim: (0,) * nd) for p in flat_params
    ]

    out_shapes = (
        jax.ShapeDtypeStruct((B_pad, L_pad), jnp.float32),   # z     (lane-dense)
        jax.ShapeDtypeStruct((B_pad, D_pad), jnp.float32),   # x_hat (lane-dense)
    )

    z_p, xhat_p = pl.pallas_call(
        _ae_kernel,
        out_shape=out_shapes,
        grid_spec=pltpu.PrefetchScalarGridSpec(
            num_scalar_prefetch=0,
            grid=grid,
            in_specs=[pl.BlockSpec((bt, D_pad), lambda i: (i, 0))] + param_specs,
            out_specs=[
                pl.BlockSpec((bt, L_pad), lambda i: (i, 0)),
                pl.BlockSpec((bt, D_pad), lambda i: (i, 0)),
            ],
        ),
        compiler_params=pltpu.CompilerParams(
            # batch axis is independent -> shards across the 2 TCs on v7x.
            dimension_semantics=("parallel",)),
    )(x_p, *flat_params)

    # Strip batch/lane padding in the wrapper (cheap XLA slices).
    z = z_p[:B, :L].astype(x.dtype)
    xhat = xhat_p[:B, :D].astype(x.dtype)
    return z, xhat


def ae_forward_ref(x, params):
    """Pure-JAX f32 reference matching the PyTorch forward."""
    h = x
    for (w, b) in params[:3]:
        h = jax.nn.sigmoid(h @ w + b)
    z = h
    for (w, b) in params[3:]:
        h = jax.nn.sigmoid(h @ w + b)
    return z, h


if __name__ == "__main__":
    ORIGINAL_DIM = 32
    LATENT_DIM = 16
    BATCH = 8

    key = jax.random.PRNGKey(0)
    key, kx = jax.random.split(key)
    x = jax.random.normal(kx, (BATCH, ORIGINAL_DIM), jnp.float32)
    params = init_ae_params(key, ORIGINAL_DIM, LATENT_DIM)

    z, xhat = ae_forward(x, params)
    jax.block_until_ready((z, xhat))

    z_ref, xhat_ref = ae_forward_ref(x, params)
    assert z.shape == (BATCH, LATENT_DIM) and xhat.shape == (BATCH, ORIGINAL_DIM)
    # bf16 MXU operands -> compare against the f32 reference with a loose tolerance.
    assert jnp.allclose(z, z_ref, atol=2e-2, rtol=2e-2), float(
        jnp.max(jnp.abs(z - z_ref)))
    assert jnp.allclose(xhat, xhat_ref, atol=2e-2, rtol=2e-2), float(
        jnp.max(jnp.abs(xhat - xhat_ref)))

    print("KERNEL_OK")
</pallas_src>

<mosaic_0001>
module attributes {stable_mosaic.version = 11 : i64} {
  func.func @_ae_kernel(%arg0: i32, %arg1: memref<8x128xf32, #tpu.memory_space<vmem>>, %arg2: memref<128x256xbf16, #tpu.memory_space<vmem>>, %arg3: memref<1x256xf32, #tpu.memory_space<vmem>>, %arg4: memref<256x64xbf16, #tpu.memory_space<vmem>>, %arg5: memref<1x64xf32, #tpu.memory_space<vmem>>, %arg6: memref<64x128xbf16, #tpu.memory_space<vmem>>, %arg7: memref<1x128xf32, #tpu.memory_space<vmem>>, %arg8: memref<128x64xbf16, #tpu.memory_space<vmem>>, %arg9: memref<1x64xf32, #tpu.memory_space<vmem>>, %arg10: memref<64x256xbf16, #tpu.memory_space<vmem>>, %arg11: memref<1x256xf32, #tpu.memory_space<vmem>>, %arg12: memref<256x128xbf16, #tpu.memory_space<vmem>>, %arg13: memref<1x128xf32, #tpu.memory_space<vmem>>, %arg14: memref<8x128xf32, #tpu.memory_space<vmem>>, %arg15: memref<8x128xf32, #tpu.memory_space<vmem>>) attributes {dimension_semantics = [#tpu.dimension_semantics<parallel>], iteration_bounds = array<i64: 1>, scalar_prefetch = 0 : i64, scratch_operands = 0 : i64, tpu.core_type = #tpu.core_type<tc>, window_params = [{transform_indices = @transform_0, window_bounds = array<i64: 8, 128>}, {pipeline_mode = #tpu.pipeline_mode<synchronous>, transform_indices = @transform_1, window_bounds = array<i64: 128, 256>}, {pipeline_mode = #tpu.pipeline_mode<synchronous>, transform_indices = @transform_2, window_bounds = array<i64: 1, 256>}, {pipeline_mode = #tpu.pipeline_mode<synchronous>, transform_indices = @transform_3, window_bounds = array<i64: 256, 64>}, {pipeline_mode = #tpu.pipeline_mode<synchronous>, transform_indices = @transform_4, window_bounds = array<i64: 1, 64>}, {pipeline_mode = #tpu.pipeline_mode<synchronous>, transform_indices = @transform_5, window_bounds = array<i64: 64, 128>}, {pipeline_mode = #tpu.pipeline_mode<synchronous>, transform_indices = @transform_6, window_bounds = array<i64: 1, 128>}, {pipeline_mode = #tpu.pipeline_mode<synchronous>, transform_indices = @transform_7, window_bounds = array<i64: 128, 64>}, {pipeline_mode = #tpu.pipeline_mode<synchronous>, transform_indices = @transform_8, window_bounds = array<i64: 1, 64>}, {pipeline_mode = #tpu.pipeline_mode<synchronous>, transform_indices = @transform_9, window_bounds = array<i64: 64, 256>}, {pipeline_mode = #tpu.pipeline_mode<synchronous>, transform_indices = @transform_10, window_bounds = array<i64: 1, 256>}, {pipeline_mode = #tpu.pipeline_mode<synchronous>, transform_indices = @transform_11, window_bounds = array<i64: 256, 128>}, {pipeline_mode = #tpu.pipeline_mode<synchronous>, transform_indices = @transform_12, window_bounds = array<i64: 1, 128>}, {transform_indices = @transform_13, window_bounds = array<i64: 8, 128>}, {transform_indices = @transform_14, window_bounds = array<i64: 8, 128>}]} {
    %c0 = arith.constant 0 : index
    %c0_0 = arith.constant 0 : index
    %0 = vector.load %arg1[%c0, %c0_0] : memref<8x128xf32, #tpu.memory_space<vmem>>, vector<8x128xf32>
    %1 = arith.truncf %0 : vector<8x128xf32> to vector<8x128xbf16>
    %c0_1 = arith.constant 0 : index
    %c0_2 = arith.constant 0 : index
    %2 = vector.load %arg2[%c0_1, %c0_2] : memref<128x256xbf16, #tpu.memory_space<vmem>>, vector<128x256xbf16>
    %cst = arith.constant dense<0.000000e+00> : vector<8x256xf32>
    %3 = tpu.matmul %1, %2, %cst {dimension_numbers = #tpu.dot_dimension_numbers<[1], [0], [0], [1], [0, 0, 1, 1], [], []>} : vector<8x128xbf16>, vector<128x256xbf16>, vector<8x256xf32> -> vector<8x256xf32>
    %c0_3 = arith.constant 0 : index
    %c0_4 = arith.constant 0 : index
    %4 = vector.load %arg3[%c0_3, %c0_4] : memref<1x256xf32, #tpu.memory_space<vmem>>, vector<1x256xf32>
    %5 = vector.broadcast %4 : vector<1x256xf32> to vector<8x256xf32>
    %6 = arith.addf %3, %5 : vector<8x256xf32>
    %7 = arith.negf %6 : vector<8x256xf32>
    %8 = math.exp %7 : vector<8x256xf32>
    %cst_5 = arith.constant 1.000000e+00 : f32
    %9 = vector.broadcast %cst_5 : f32 to vector<8x256xf32>
    %10 = arith.addf %9, %8 : vector<8x256xf32>
    %11 = arith.divf %9, %10 : vector<8x256xf32>
    %12 = arith.truncf %11 : vector<8x256xf32> to vector<8x256xbf16>
    %c0_6 = arith.constant 0 : index
    %c0_7 = arith.constant 0 : index
    %13 = vector.load %arg4[%c0_6, %c0_7] : memref<256x64xbf16, #tpu.memory_space<vmem>>, vector<256x64xbf16>
    %cst_8 = arith.constant dense<0.000000e+00> : vector<8x64xf32>
    %14 = tpu.matmul %12, %13, %cst_8 {dimension_numbers = #tpu.dot_dimension_numbers<[1], [0], [0], [1], [0, 0, 1, 1], [], []>} : vector<8x256xbf16>, vector<256x64xbf16>, vector<8x64xf32> -> vector<8x64xf32>
    %c0_9 = arith.constant 0 : index
    %c0_10 = arith.constant 0 : index
    %15 = vector.load %arg5[%c0_9, %c0_10] : memref<1x64xf32, #tpu.memory_space<vmem>>, vector<1x64xf32>
    %16 = vector.broadcast %15 : vector<1x64xf32> to vector<8x64xf32>
    %17 = arith.addf %14, %16 : vector<8x64xf32>
    %18 = arith.negf %17 : vector<8x64xf32>
    %19 = math.exp %18 : vector<8x64xf32>
    %cst_11 = arith.constant 1.000000e+00 : f32
    %20 = vector.broadcast %cst_11 : f32 to vector<8x64xf32>
    %21 = arith.addf %20, %19 : vector<8x64xf32>
    %22 = arith.divf %20, %21 : vector<8x64xf32>
    %23 = arith.truncf %22 : vector<8x64xf32> to vector<8x64xbf16>
    %c0_12 = arith.constant 0 : index
    %c0_13 = arith.constant 0 : index
    %24 = vector.load %arg6[%c0_12, %c0_13] : memref<64x128xbf16, #tpu.memory_space<vmem>>, vector<64x128xbf16>
    %cst_14 = arith.constant dense<0.000000e+00> : vector<8x128xf32>
    %25 = tpu.matmul %23, %24, %cst_14 {dimension_numbers = #tpu.dot_dimension_numbers<[1], [0], [0], [1], [0, 0, 1, 1], [], []>} : vector<8x64xbf16>, vector<64x128xbf16>, vector<8x128xf32> -> vector<8x128xf32>
    %c0_15 = arith.constant 0 : index
    %c0_16 = arith.constant 0 : index
    %26 = vector.load %arg7[%c0_15, %c0_16] : memref<1x128xf32, #tpu.memory_space<vmem>>, vector<1x128xf32>
    %27 = vector.broadcast %26 : vector<1x128xf32> to vector<8x128xf32>
    %28 = arith.addf %25, %27 : vector<8x128xf32>
    %29 = arith.negf %28 : vector<8x128xf32>
    %30 = math.exp %29 : vector<8x128xf32>
    %cst_17 = arith.constant 1.000000e+00 : f32
    %31 = vector.broadcast %cst_17 : f32 to vector<8x128xf32>
    %32 = arith.addf %31, %30 : vector<8x128xf32>
    %33 = arith.divf %31, %32 : vector<8x128xf32>
    %c0_18 = arith.constant 0 : index
    %c0_19 = arith.constant 0 : index
    %34 = vector.load %arg14[%c0_18, %c0_19] : memref<8x128xf32, #tpu.memory_space<vmem>>, vector<8x128xf32>
    tpu.vector_store %arg14[%c0_18, %c0_19], %33 {strides = array<i32>} : memref<8x128xf32, #tpu.memory_space<vmem>>, vector<8x128xf32>,
    %35 = arith.truncf %33 : vector<8x128xf32> to vector<8x128xbf16>
    %c0_20 = arith.constant 0 : index
    %c0_21 = arith.constant 0 : index
    %36 = vector.load %arg8[%c0_20, %c0_21] : memref<128x64xbf16, #tpu.memory_space<vmem>>, vector<128x64xbf16>
    %cst_22 = arith.constant dense<0.000000e+00> : vector<8x64xf32>
    %37 = tpu.matmul %35, %36, %cst_22 {dimension_numbers = #tpu.dot_dimension_numbers<[1], [0], [0], [1], [0, 0, 1, 1], [], []>} : vector<8x128xbf16>, vector<128x64xbf16>, vector<8x64xf32> -> vector<8x64xf32>
    %c0_23 = arith.constant 0 : index
    %c0_24 = arith.constant 0 : index
    %38 = vector.load %arg9[%c0_23, %c0_24] : memref<1x64xf32, #tpu.memory_space<vmem>>, vector<1x64xf32>
    %39 = vector.broadcast %38 : vector<1x64xf32> to vector<8x64xf32>
    %40 = arith.addf %37, %39 : vector<8x64xf32>
    %41 = arith.negf %40 : vector<8x64xf32>
    %42 = math.exp %41 : vector<8x64xf32>
    %cst_25 = arith.constant 1.000000e+00 : f32
    %43 = vector.broadcast %cst_25 : f32 to vector<8x64xf32>
    %44 = arith.addf %43, %42 : vector<8x64xf32>
    %45 = arith.divf %43, %44 : vector<8x64xf32>
    %46 = arith.truncf %45 : vector<8x64xf32> to vector<8x64xbf16>
    %c0_26 = arith.constant 0 : index
    %c0_27 = arith.constant 0 : index
    %47 = vector.load %arg10[%c0_26, %c0_27] : memref<64x256xbf16, #tpu.memory_space<vmem>>, vector<64x256xbf16>
    %cst_28 = arith.constant dense<0.000000e+00> : vector<8x256xf32>
    %48 = tpu.matmul %46, %47, %cst_28 {dimension_numbers = #tpu.dot_dimension_numbers<[1], [0], [0], [1], [0, 0, 1, 1], [], []>} : vector<8x64xbf16>, vector<64x256xbf16>, vector<8x256xf32> -> vector<8x256xf32>
    %c0_29 = arith.constant 0 : index
    %c0_30 = arith.constant 0 : index
    %49 = vector.load %arg11[%c0_29, %c0_30] : memref<1x256xf32, #tpu.memory_space<vmem>>, vector<1x256xf32>
    %50 = vector.broadcast %49 : vector<1x256xf32> to vector<8x256xf32>
    %51 = arith.addf %48, %50 : vector<8x256xf32>
    %52 = arith.negf %51 : vector<8x256xf32>
    %53 = math.exp %52 : vector<8x256xf32>
    %cst_31 = arith.constant 1.000000e+00 : f32
    %54 = vector.broadcast %cst_31 : f32 to vector<8x256xf32>
    %55 = arith.addf %54, %53 : vector<8x256xf32>
    %56 = arith.divf %54, %55 : vector<8x256xf32>
    %57 = arith.truncf %56 : vector<8x256xf32> to vector<8x256xbf16>
    %c0_32 = arith.constant 0 : index
    %c0_33 = arith.constant 0 : index
    %58 = vector.load %arg12[%c0_32, %c0_33] : memref<256x128xbf16, #tpu.memory_space<vmem>>, vector<256x128xbf16>
    %cst_34 = arith.constant dense<0.000000e+00> : vector<8x128xf32>
    %59 = tpu.matmul %57, %58, %cst_34 {dimension_numbers = #tpu.dot_dimension_numbers<[1], [0], [0], [1], [0, 0, 1, 1], [], []>} : vector<8x256xbf16>, vector<256x128xbf16>, vector<8x128xf32> -> vector<8x128xf32>
    %c0_35 = arith.constant 0 : index
    %c0_36 = arith.constant 0 : index
    %60 = vector.load %arg13[%c0_35, %c0_36] : memref<1x128xf32, #tpu.memory_space<vmem>>, vector<1x128xf32>
    %61 = vector.broadcast %60 : vector<1x128xf32> to vector<8x128xf32>
    %62 = arith.addf %59, %61 : vector<8x128xf32>
    %63 = arith.negf %62 : vector<8x128xf32>
    %64 = math.exp %63 : vector<8x128xf32>
    %cst_37 = arith.constant 1.000000e+00 : f32
    %65 = vector.broadcast %cst_37 : f32 to vector<8x128xf32>
    %66 = arith.addf %65, %64 : vector<8x128xf32>
    %67 = arith.divf %65, %66 : vector<8x128xf32>
    %c0_38 = arith.constant 0 : index
    %c0_39 = arith.constant 0 : index
    %68 = vector.load %arg15[%c0_38, %c0_39] : memref<8x128xf32, #tpu.memory_space<vmem>>, vector<8x128xf32>
    tpu.vector_store %arg15[%c0_38, %c0_39], %67 {strides = array<i32>} : memref<8x128xf32, #tpu.memory_space<vmem>>, vector<8x128xf32>,
    return
  }
  func.func @transform_0(%arg0: i32) -> (i32, i32) {
    %c0_i32 = arith.constant 0 : i32
    %c0_i32_0 = arith.constant 0 : i32
    return %arg0, %c0_i32 : i32, i32
  }
  func.func @transform_1(%arg0: i32) -> (i32, i32) {
    %c0_i32 = arith.constant 0 : i32
    %c0_i32_0 = arith.constant 0 : i32
    %c0_i32_1 = arith.constant 0 : i32
    return %c0_i32, %c0_i32_0 : i32, i32
  }
  func.func @transform_2(%arg0: i32) -> (i32, i32) {
    %c0_i32 = arith.constant 0 : i32
    %c0_i32_0 = arith.constant 0 : i32
    %c0_i32_1 = arith.constant 0 : i32
    return %c0_i32, %c0_i32_0 : i32, i32
  }
  func.func @transform_3(%arg0: i32) -> (i32, i32) {
    %c0_i32 = arith.constant 0 : i32
    %c0_i32_0 = arith.constant 0 : i32
    %c0_i32_1 = arith.constant 0 : i32
    return %c0_i32, %c0_i32_0 : i32, i32
  }
  func.func @transform_4(%arg0: i32) -> (i32, i32) {
    %c0_i32 = arith.constant 0 : i32
    %c0_i32_0 = arith.constant 0 : i32
    %c0_i32_1 = arith.constant 0 : i32
    return %c0_i32, %c0_i32_0 : i32, i32
  }
  func.func @transform_5(%arg0: i32) -> (i32, i32) {
    %c0_i32 = arith.constant 0 : i32
    %c0_i32_0 = arith.constant 0 : i32
    %c0_i32_1 = arith.constant 0 : i32
    return %c0_i32, %c0_i32_0 : i32, i32
  }
  func.func @transform_6(%arg0: i32) -> (i32, i32) {
    %c0_i32 = arith.constant 0 : i32
    %c0_i32_0 = arith.constant 0 : i32
    %c0_i32_1 = arith.constant 0 : i32
    return %c0_i32, %c0_i32_0 : i32, i32
  }
  func.func @transform_7(%arg0: i32) -> (i32, i32) {
    %c0_i32 = arith.constant 0 : i32
    %c0_i32_0 = arith.constant 0 : i32
    %c0_i32_1 = arith.constant 0 : i32
    return %c0_i32, %c0_i32_0 : i32, i32
  }
  func.func @transform_8(%arg0: i32) -> (i32, i32) {
    %c0_i32 = arith.constant 0 : i32
    %c0_i32_0 = arith.constant 0 : i32
    %c0_i32_1 = arith.constant 0 : i32
    return %c0_i32, %c0_i32_0 : i32, i32
  }
  func.func @transform_9(%arg0: i32) -> (i32, i32) {
    %c0_i32 = arith.constant 0 : i32
    %c0_i32_0 = arith.constant 0 : i32
    %c0_i32_1 = arith.constant 0 : i32
    return %c0_i32, %c0_i32_0 : i32, i32
  }
  func.func @transform_10(%arg0: i32) -> (i32, i32) {
    %c0_i32 = arith.constant 0 : i32
    %c0_i32_0 = arith.constant 0 : i32
    %c0_i32_1 = arith.constant 0 : i32
    return %c0_i32, %c0_i32_0 : i32, i32
  }
  func.func @transform_11(%arg0: i32) -> (i32, i32) {
    %c0_i32 = arith.constant 0 : i32
    %c0_i32_0 = arith.constant 0 : i32
    %c0_i32_1 = arith.constant 0 : i32
    return %c0_i32, %c0_i32_0 : i32, i32
  }
  func.func @transform_12(%arg0: i32) -> (i32, i32) {
    %c0_i32 = arith.constant 0 : i32
    %c0_i32_0 = arith.constant 0 : i32
    %c0_i32_1 = arith.constant 0 : i32
    return %c0_i32, %c0_i32_0 : i32, i32
  }
  func.func @transform_13(%arg0: i32) -> (i32, i32) {
    %c0_i32 = arith.constant 0 : i32
    %c0_i32_0 = arith.constant 0 : i32
    return %arg0, %c0_i32 : i32, i32
  }
  func.func @transform_14(%arg0: i32) -> (i32, i32) {
    %c0_i32 = arith.constant 0 : i32
    %c0_i32_0 = arith.constant 0 : i32
    return %arg0, %c0_i32 : i32, i32
  }
}

</mosaic_0001>

<bundles_post_ra>
// kernel: ae_forward.1
= control target key start
LH: loop header
LB: loop body
LE: loop exit
PB: predicated region body
PF: predicated region fallthrough
CT: control target
= control target key end

     0   :  { %20 = vsyncpa [#allocation3], 0  ;;  %v1266_v2 = vmov 0   ;;  %s1593_s0 = inlined_call_operand.vmem [shape: f32[8,128], index: 0, kind: input, shape index: {}]   ;;  %s1594_s1 = inlined_call_operand.vmem [shape: bf16[128,256], index: 1, kind: input, shape index: {}]   ;;  %s1595_s2 = inlined_call_operand.vmem [shape: f32[1,256], index: 2, kind: input, shape index: {}]   ;;  %s1596_s3 = inlined_call_operand.vmem [shape: bf16[256,64], index: 3, kind: input, shape index: {}]   ;;  %s1597_s4 = inlined_call_operand.vmem [shape: f32[1,64], index: 4, kind: input, shape index: {}]   ;;  %s1598_s5 = inlined_call_operand.vmem [shape: bf16[64,128], index: 5, kind: input, shape index: {}]   ;;  %s1599_s6 = inlined_call_operand.vmem [shape: f32[1,128], index: 6, kind: input, shape index: {}]   ;;  %s1600_s7 = inlined_call_operand.vmem [shape: bf16[128,64], index: 7, kind: input, shape index: {}]   ;;  %s1601_s8 = inlined_call_operand.vmem [shape: f32[1,64], index: 8, kind: input, shape index: {}]   ;;  %s1602_s9 = inlined_call_operand.vmem [shape: bf16[64,256], index: 9, kind: input, shape index: {}]   ;;  %s1603_s10 = inlined_call_operand.vmem [shape: f32[1,256], index: 10, kind: input, shape index: {}]   ;;  %s1604_s11 = inlined_call_operand.vmem [shape: bf16[256,128], index: 11, kind: input, shape index: {}]   ;;  %s1605_s12 = inlined_call_operand.vmem [shape: f32[1,128], index: 12, kind: input, shape index: {}]   ;;  %s1606_s13 = inlined_call_operand.hbm [shape: f32[8,128], index: 13, kind: output, shape index: {0}]   ;;  %s1607_s14 = inlined_call_operand.hbm [shape: f32[8,128], index: 14, kind: output, shape index: {1}]  }
   0x1   :  { %v1110_v0 = vld [vmem:[%s1594_s1 + $0x74] ss:$8 sps:$4 sm:$0xff]   ;;  %v1112_v1 = vld [vmem:[%s1594_s1 + $0x70] ss:$8 sps:$4 sm:$0xff]   ;;  %191 = vmatprep.mubr.bf16.mxu0 %v1266_v2  ;;  %v1113_v3 = vld [vmem:[%s1594_s1 + $0x64] ss:$8 sps:$4 sm:$0xff]  }
   0x2   :  { %159 = vmatprep.subr.bf16.mxu0 %v1110_v0  ;;  %v1115_v4 = vld [vmem:[%s1594_s1 + $0x60] ss:$8 sps:$4 sm:$0xff]   ;;  %v1116_v5 = vld [vmem:[%s1594_s1 + $0x54] ss:$8 sps:$4 sm:$0xff]   ;;  %v1118_v6 = vld [vmem:[%s1594_s1 + $0x50] ss:$8 sps:$4 sm:$0xff]  }
   0x3   :  { %160 = vmatpush1.bf16.msra.mxu0 %v1112_v1  ;;  %v1119_v7 = vld [vmem:[%s1594_s1 + $0x44] ss:$8 sps:$4 sm:$0xff]   ;;  %v1121_v8 = vld [vmem:[%s1594_s1 + $0x40] ss:$8 sps:$4 sm:$0xff]   ;;  %v1122_v9 = vld [vmem:[%s1594_s1 + $0x34] ss:$8 sps:$4 sm:$0xff]  }
   0x4   :  { %161 = vmatprep.subr.bf16.mxu0 %v1113_v3  ;;  %v1124_v10 = vld [vmem:[%s1594_s1 + $0x30] ss:$8 sps:$4 sm:$0xff]   ;;  %v1125_v11 = vld [vmem:[%s1594_s1 + $0x24] ss:$8 sps:$4 sm:$0xff]   ;;  %v1127_v12 = vld [vmem:[%s1594_s1 + $0x20] ss:$8 sps:$4 sm:$0xff]  }
   0x5   :  { %v1128_v13 = vld [vmem:[%s1594_s1 + $0x14] ss:$8 sps:$4 sm:$0xff]   ;;  %v1130_v14 = vld [vmem:[%s1594_s1 + $0x10] ss:$8 sps:$4 sm:$0xff]   ;;  %v1131_v15 = vld [vmem:[%s1594_s1 + $0x4] ss:$8 sps:$4 sm:$0xff]  }
   0x6   :  { %v1133_v16 = vld [vmem:[%s1594_s1] ss:$8 sps:$4 sm:$0xff]  }
   0x7   :  { %162 = vmatpush1.bf16.msra.mxu0 %v1115_v4  ;;  %v49_v17 = vld [vmem:[%s1593_s0] sm:$0xff] }
   0x8   :  { %163 = vmatprep.subr.bf16.mxu0 %v1116_v5  ;;  %v50_v18 = vpack.c.bf16 %v49_v17, %v49_v17 }
   0xb   :  { %164 = vmatpush1.bf16.msra.mxu0 %v1118_v6 }
   0xc   :  { %165 = vmatprep.subr.bf16.mxu0 %v1119_v7 }
   0xf   :  { %166 = vmatpush1.bf16.msra.mxu0 %v1121_v8 }
  0x10   :  { %167 = vmatprep.subr.bf16.mxu0 %v1122_v9 }
  0x13   :  { %168 = vmatpush1.bf16.msra.mxu0 %v1124_v10 }
  0x14   :  { %169 = vmatprep.subr.bf16.mxu0 %v1125_v11 }
  0x17   :  { %170 = vmatpush1.bf16.msra.mxu0 %v1127_v12 }
  0x18   :  { %171 = vmatprep.subr.bf16.mxu0 %v1128_v13 }
  0x1b   :  { %172 = vmatpush1.bf16.msra.mxu0 %v1130_v14 }
  0x1c   :  { %173 = vmatprep.subr.bf16.mxu0 %v1131_v15 }
  0x1f   :  { %174 = vmatpush1.bf16.msra.mxu0 %v1133_v16 }
  0x22   :  { %192 = vmatmul.mubr.bf16.vlgmr.msra.gmra.mxu0 %v50_v18 }
  0x23   :  { %700 = vmatprep.mubr.bf16.mxu0 %v1266_v2 }
  0x24   :  { %21 = vsyncpa [#allocation5], 0  ;;  %v1134_v19 = vld [vmem:[%s1596_s3 + $0x78] sm:$0xff]   ;;  %v1136_v21 = vld [vmem:[%s1596_s3 + $0x70] sm:$0xff]   ;;  %v69_v35 = vlaneseq  ;;  %v1267_v59 = vmov 0.0   ;;  %vm1268_vm0 = vmmov 0  }
  0x25   :  { %v1135_v20 = vld [vmem:[%s1596_s3 + $0x38] sm:$0xff]   ;;  %1015 = vmatprep.subr.bf16.mxu1 %v1134_v19  ;;  %v1137_v22 = vld [vmem:[%s1596_s3 + $0x30] sm:$0xff]   ;;  %v1138_v23 = vld [vmem:[%s1596_s3 + $0x68] sm:$0xff]   ;;  %vm435_vm1 = vcmask 523264  }
  0x26   :  { %1016 = vmatpush3.bf16.msra.mxu1 %v1135_v20  ;;  %v1139_v24 = vld [vmem:[%s1596_s3 + $0x28] sm:$0xff]   ;;  %v1140_v25 = vld [vmem:[%s1596_s3 + $0x60] sm:$0xff]   ;;  %v1142_v27 = vld [vmem:[%s1596_s3 + $0x58] sm:$0xff]   ;;  %v1445_v36 = vshrl.u32 %v69_v35, 7 }
  0x27   :  { %1017 = vmatprep.subr.bf16.mxu1 %v1136_v21  ;;  %v1141_v26 = vld [vmem:[%s1596_s3 + $0x20] sm:$0xff]   ;;  %v1143_v28 = vld [vmem:[%s1596_s3 + $0x18] sm:$0xff]   ;;  %v1144_v29 = vld [vmem:[%s1596_s3 + $0x50] sm:$0xff]  }
  0x28   :  { %v1145_v30 = vld [vmem:[%s1596_s3 + $0x10] sm:$0xff]   ;;  %v1146_v31 = vld [vmem:[%s1596_s3 + $0x48] sm:$0xff]   ;;  %v1148_v33 = vld [vmem:[%s1596_s3 + $0x40] sm:$0xff]   ;;  %v71_v37 = vsub.s32 0, %v1445_v36  ;;  %v75_v39 = vsub.s32 1, %v1445_v36 }
  0x29   :  { %v1147_v32 = vld [vmem:[%s1596_s3 + $0x8] sm:$0xff]   ;;  %v1149_v34 = vld [vmem:[%s1596_s3] sm:$0xff]   ;;  %v1150_v58 = vld [vmem:[%s1598_s5 + $0x18] sm:$0xff]  }
  0x2a   :  { %1018 = vmatpush3.bf16.msra.mxu1 %v1137_v22  ;;  %v67_v38 = vld [vmem:[%s1595_s2] sm:$0x3]  ;;  %v1151_v60 = vld [vmem:[%s1598_s5 + $0x10] sm:$0xff]   ;;  %v1152_v61 = vld [vmem:[%s1598_s5 + $0x8] sm:$0xff]  }
  0x2b   :  { %1019 = vmatprep.subr.bf16.mxu1 %v1138_v23  ;;  %v72_v40 = vrot.slane %v67_v38, %v71_v37  ;;  %v76_v41 = vrot.slane %v67_v38, %v75_v39  ;;  %v1153_v62 = vld [vmem:[%s1598_s5] sm:$0xff]   ;;  %v1154_v11 = vld [vmem:[%s1600_s7 + $0x38] sm:$0xff]   ;;  %v1155_v12 = vld [vmem:[%s1600_s7 + $0x30] sm:$0xff]  }
  0x2c   :  { %v951_v0 = vld [vmem:[%s1597_s4] ss:$0 sm:$0xff]  ;;  %v1156_v13 = vld [vmem:[%s1600_s7 + $0x28] sm:$0xff]   ;;  %v1158_v15 = vld [vmem:[%s1600_s7 + $0x18] sm:$0xff]  }
  0x2d   :  { %v1157_v14 = vld [vmem:[%s1600_s7 + $0x20] sm:$0xff]   ;;  %v1159_v16 = vld [vmem:[%s1600_s7 + $0x10] sm:$0xff]   ;;  %v1160_v17 = vld [vmem:[%s1600_s7 + $0x8] sm:$0xff]  }
  0x2e   :  { %1020 = vmatpush3.bf16.msra.mxu1 %v1139_v24  ;;  %v1161_v18 = vld [vmem:[%s1600_s7] sm:$0xff]   ;;  %v1168_v35 = vld [vmem:[%s1602_s9 + $0x10] ss:$8 sps:$4 sm:$0xff]  }
  0x2f   :  { %1021 = vmatprep.subr.bf16.mxu1 %v1140_v25  ;;  %v969_v19 = vld [vmem:[%s1599_s6] ss:$0 sm:$0xff]  ;;  %v1173_v38 = vld [vmem:[%s1602_s9 + $0x4] ss:$8 sps:$4 sm:$0xff]  }
  0x32   :  { %1022 = vmatpush3.bf16.msra.mxu1 %v1141_v26 }
  0x33   :  { %1023 = vmatprep.subr.bf16.mxu1 %v1142_v27 }
  0x36   :  { %1024 = vmatpush3.bf16.msra.mxu1 %v1143_v28 }
  0x37   :  { %1025 = vmatprep.subr.bf16.mxu1 %v1144_v29 }
  0x3a   :  { %1026 = vmatpush3.bf16.msra.mxu1 %v1145_v30  ;;  %v1164_v30 = vld [vmem:[%s1602_s9 + $0x34] ss:$8 sps:$4 sm:$0xff]  }
  0x3b   :  { %1027 = vmatprep.subr.bf16.mxu1 %v1146_v31  ;;  %v1162_v31 = vld [vmem:[%s1602_s9 + $0x30] ss:$8 sps:$4 sm:$0xff]   ;;  %676 = vmatprep.subr.bf16.mxu0 %v1164_v30 }
  0x3c   :  { %677 = vmatpush1.bf16.msra.mxu0 %v1162_v31 }
  0x3e   :  { %1028 = vmatpush3.bf16.msra.mxu1 %v1147_v32  ;;  %v1167_v32 = vld [vmem:[%s1602_s9 + $0x24] ss:$8 sps:$4 sm:$0xff]  }
  0x3f   :  { %1029 = vmatprep.subr.bf16.mxu1 %v1148_v33  ;;  %v1165_v33 = vld [vmem:[%s1602_s9 + $0x20] ss:$8 sps:$4 sm:$0xff]   ;;  %678 = vmatprep.subr.bf16.mxu0 %v1167_v32 }
  0x40   :  { %679 = vmatpush1.bf16.msra.mxu0 %v1165_v33 }
  0x42   :  { %1030 = vmatpush3.bf16.msra.mxu1 %v1149_v34  ;;  %v1170_v34 = vld [vmem:[%s1602_s9 + $0x14] ss:$8 sps:$4 sm:$0xff]  }
  0x43   :  { %1073 = vmatprep.subr.bf16.mxu1 %v1267_v59  ;;  %680 = vmatprep.subr.bf16.mxu0 %v1170_v34 }
  0x44   :  { %681 = vmatpush1.bf16.msra.mxu0 %v1168_v35 }
  0x45   :  { %682 = vmatprep.subr.bf16.mxu0 %v1173_v38 }
  0xe2   :  { %v193_v42 = vpop.f32.mrf.mxu0 }
  0xe3   :  { %v194_v43 = vadd.f32 %v193_v42, %v72_v40  ;;  %v1171_v40 = vld [vmem:[%s1602_s9] ss:$8 sps:$4 sm:$0xff]  }
  0xe4   :  { %v195_v44 = vpop.f32.mrf.mxu0  ;;  %683 = vmatpush1.bf16.msra.mxu0 %v1171_v40 }
  0xe5   :  { %v949_v45 = vmul.f32 -1.442695, %v194_v43  ;;  %v196_v46 = vadd.f32 %v195_v44, %v76_v41  ;;  %v976_v41 = vld [vmem:[%s1601_s8] ss:$0 sm:$0xff] }
  0xe6   :  { %v197_v47 = vpop.f32.mrf.mxu0 }
  0xe7   :  { %1190 = vpow2.f32 %v949_v45  ;;  %v950_v48 = vmul.f32 -1.442695, %v196_v46 }
  0xe8   :  { %v198_v49 = vpop.f32.mrf.mxu0 }
  0xe9   :  { %1192 = vpow2.f32 %v950_v48 }
  0xf4   :  { %v1191_v50 = vpop.eup %1190 }
  0xf5   :  { %v206_v51 = vadd.f32 1.0, %v1191_v50 }
  0xf6   :  { %v1193_v52 = vpop.eup %1192 }
  0xf7   :  { %v207_v53 = vadd.f32 1.0, %v1193_v52  ;;  %1194 = vrcp.f32 %v206_v51  ;;  %v1174_v52 = vld [vmem:[%s1604_s11 + $0x78] sm:$0xff]  }
  0xf8   :  { %1051 = vmatprep.subr.bf16.mxu0 %v1174_v52 }
  0xf9   :  { %1196 = vrcp.f32 %v207_v53  ;;  %v1175_v53 = vld [vmem:[%s1604_s11 + $0x38] sm:$0xff]  }
 0x104   :  { %v1195_v54 = vpop.eup %1194 }
 0x105   :  { %v212_v57 = vpack.c.bf16 %v1195_v54, %v1195_v54  ;;  %v1176_v54 = vld [vmem:[%s1604_s11 + $0x70] sm:$0xff]  }
 0x106   :  { %v1197_v55 = vpop.eup %1196 }
 0x107   :  { %v213_v56 = vpack.c.bf16 %v1197_v55, %v1197_v55  ;;  %v1177_v55 = vld [vmem:[%s1604_s11 + $0x30] sm:$0xff]  }
 0x109   :  { %381 = vmatprep.mubr.bf16.mxu1 %v213_v56  ;;  %v1178_v56 = vld [vmem:[%s1604_s11 + $0x68] sm:$0xff]  }
 0x10a   :  { %382 = vmatmul.mubr.bf16.vlgmr.msra.gmra.mxu1 %v212_v57  ;;  %v1179_v57 = vld [vmem:[%s1604_s11 + $0x28] sm:$0xff]  }
 0x10b   :  { %1074 = vmatpush3.bf16.msra.mxu1 %v1150_v58  ;;  %1081 = vmatprep.mubr.msk.bf16.mxu1 %vm1268_vm0, %v1267_v59  ;;  %v1180_v58 = vld [vmem:[%s1604_s11 + $0x60] sm:$0xff]  }
 0x10c   :  { %1075 = vmatprep.subr.bf16.mxu1 %v1267_v59 }
 0x10f   :  { %1076 = vmatpush3.bf16.msra.mxu1 %v1151_v60  ;;  %v1182_v60 = vld [vmem:[%s1604_s11 + $0x58] sm:$0xff]  }
 0x110   :  { %1077 = vmatprep.subr.bf16.mxu1 %v1267_v59 }
 0x113   :  { %1078 = vmatpush3.bf16.msra.mxu1 %v1152_v61  ;;  %v1183_v61 = vld [vmem:[%s1604_s11 + $0x18] sm:$0xff]  }
 0x114   :  { %1079 = vmatprep.subr.bf16.mxu1 %v1267_v59 }
 0x117   :  { %1080 = vmatpush3.bf16.msra.mxu1 %v1153_v62  ;;  %v1184_v62 = vld [vmem:[%s1604_s11 + $0x50] sm:$0xff]  }
 0x118   :  { %1085 = vmatprep.subr.bf16.mxu1 %v1267_v59 }
 0x1ca   :  { %v1031_v63 = vpop.f32.mrf.mxu1 }
 0x1cc   :  { %v1032_v1 = vpop.f32.mrf.mxu1 }
 0x1cd   :  { %v1033_v2 = vadd.f32 %v1032_v1, %v1031_v63  ;;  %v1185_v63 = vld [vmem:[%s1604_s11 + $0x10] sm:$0xff]   ;;  %v1187_v1 = vld [vmem:[%s1604_s11 + $0x8] sm:$0xff]  }
 0x1ce   :  { %v1034_v3 = vpop.f32.mrf.mxu1 }
 0x1cf   :  { %v384_v4 = vadd.f32 %v1033_v2, %v951_v0  ;;  %v1186_v0 = vld [vmem:[%s1604_s11 + $0x48] sm:$0xff]   ;;  %v1188_v2 = vld [vmem:[%s1604_s11 + $0x40] sm:$0xff]  }
 0x1d0   :  { %v1035_v5 = vpop.f32.mrf.mxu1  ;;  %v1189_v3 = vld [vmem:[%s1604_s11] sm:$0xff]  }
 0x1d1   :  { %v968_v6 = vmul.f32 -1.442695, %v384_v4  ;;  %v613_v4 = vld [vmem:[%s1603_s10] sm:$0x3]  ;;  %s1269_s10 = smov [#allocation2]  }
 0x1d2   :  { %v618_v5 = vrot.slane %v613_v4, %v71_v37 }
 0x1d3   :  { %1198 = vpow2.f32 %v968_v6  ;;  %v622_v6 = vrot.slane %v613_v4, %v75_v39 }
 0x1e0   :  { %v1199_v7 = vpop.eup %1198 }
 0x1e1   :  { %v392_v8 = vadd.f32 1.0, %v1199_v7 }
 0x1e3   :  { %1200 = vrcp.f32 %v392_v8 }
 0x1f0   :  { %v1201_v9 = vpop.eup %1200 }
 0x1f1   :  { %v395_v10 = vpack.c.bf16 %v1201_v9, %v1201_v9 }
 0x1f3   :  { %1082 = vmatmul.mubr.msk.bf16.vlgmr.msra.gmra.mxu1 %vm435_vm1, %v395_v10 }
 0x1f4   :  { %1101 = vmatprep.mubr.msk.bf16.mxu1 %vm1268_vm0, %v1267_v59  ;;  %1086 = vmatpush3.bf16.msra.mxu1 %v1154_v11 }
 0x1f5   :  { %1087 = vmatprep.subr.bf16.mxu1 %v1267_v59 }
 0x1f8   :  { %1088 = vmatpush3.bf16.msra.mxu1 %v1155_v12 }
 0x1f9   :  { %1089 = vmatprep.subr.bf16.mxu1 %v1267_v59 }
 0x1fc   :  { %1090 = vmatpush3.bf16.msra.mxu1 %v1156_v13 }
 0x1fd   :  { %1091 = vmatprep.subr.bf16.mxu1 %v1267_v59 }
 0x200   :  { %1092 = vmatpush3.bf16.msra.mxu1 %v1157_v14 }
 0x201   :  { %1093 = vmatprep.subr.bf16.mxu1 %v1267_v59 }
 0x204   :  { %1094 = vmatpush3.bf16.msra.mxu1 %v1158_v15 }
 0x205   :  { %1095 = vmatprep.subr.bf16.mxu1 %v1267_v59 }
 0x208   :  { %1096 = vmatpush3.bf16.msra.mxu1 %v1159_v16 }
 0x209   :  { %1097 = vmatprep.subr.bf16.mxu1 %v1267_v59 }
 0x20c   :  { %1098 = vmatpush3.bf16.msra.mxu1 %v1160_v17 }
 0x20d   :  { %1099 = vmatprep.subr.bf16.mxu1 %v1267_v59  ;;  %v1181_v59 = vld [vmem:[%s1604_s11 + $0x20] sm:$0xff]   ;;  %s911_s11 = sshll.u32 %s1269_s10, 4  ;;  %s912_s11 = int_to_ptr.vmem [resolvable:$true] %s911_s11 }
 0x20e   :  { %s1222_s7 = scalar_lea.vmem %s912_s11, 128  ;;  %p1227_p1 = scmp.lt.s32.totalorder %s912_s11, %s912_s11 }
 0x20f   :  { %p1223_p0 = scmp.ne.s32.totalorder %s912_s11, %s1222_s7  ;;  %p1228_p2 = scmp.lt.s32.totalorder %s1222_s7, %s1222_s7 }
 0x210   :  { %1100 = vmatpush3.bf16.msra.mxu1 %v1161_v18 }
 0x211   :  { %p1229_p3 = por %p1228_p2, %p1227_p1 }
 0x213   :  { %p1230_p4 = pnand %p1229_p3, %p1223_p0 }
 0x2b3   :  { %v473_v20 = vpop.f32.mrf.mxu1 }
 0x2b4   :  { %v474_v21 = vadd.f32 %v969_v19, %v473_v20 }
 0x2b5   :  { %v1083_v22 = vpop.f32.mrf.mxu1 }
 0x2b6   :  { %v975_v23 = vmul.f32 -1.442695, %v474_v21 }
 0x2b7   :  { %v476_v24 = vpop.f32.mrf.mxu1 }
 0x2b8   :  { %1202 = vpow2.f32 %v975_v23 }
 0x2b9   :  { %v1084_v25 = vpop.f32.mrf.mxu1 }
 0x2c5   :  { %v1203_v26 = vpop.eup %1202 }
 0x2c6   :  { %v482_v27 = vadd.f32 1.0, %v1203_v26 }
 0x2c8   :  { %1204 = vrcp.f32 %v482_v27 }
 0x2d5   :  { %v1205_v28 = vpop.eup %1204 }
 0x2d6   :  { %485 = vst [vmem:[#allocation2] sm:$0xff] %v1205_v28  ;;  %v486_v29 = vpack.c.bf16 %v1205_v28, %v1205_v28 }
 0x2d8   :  { %1102 = vmatmul.mubr.bf16.vlgmr.msra.gmra.mxu1 %v486_v29 }
 0x398   :  { %v592_v42 = vpop.f32.mrf.mxu1 }
 0x399   :  { %v593_v43 = vadd.f32 %v976_v41, %v592_v42 }
 0x39a   :  { %v1103_v44 = vpop.f32.mrf.mxu1 }
 0x39b   :  { %v985_v45 = vmul.f32 -1.442695, %v593_v43 }
 0x39c   :  { %v595_v46 = vpop.f32.mrf.mxu1 }
 0x39d   :  { %1206 = vpow2.f32 %v985_v45 }
 0x39e   :  { %v1104_v47 = vpop.f32.mrf.mxu1 }
 0x3aa   :  { %v1207_v48 = vpop.eup %1206 }
 0x3ab   :  { %v601_v49 = vadd.f32 1.0, %v1207_v48 }
 0x3ad   :  { %1208 = vrcp.f32 %v601_v49 }
 0x3ba   :  { %v1209_v50 = vpop.eup %1208 }
 0x3bb   :  { %v604_v51 = vpack.c.bf16 %v1209_v50, %v1209_v50 }
 0x3bd   :  { %994 = vmatmul.mubr.msk.bf16.vlgmr.msra.gmra.mxu0 %vm435_vm1, %v604_v51 }
 0x3be   :  { %1052 = vmatpush3.bf16.msra.mxu0 %v1175_v53 }
 0x3bf   :  { %1053 = vmatprep.subr.bf16.mxu0 %v1176_v54 }
 0x3c2   :  { %1054 = vmatpush3.bf16.msra.mxu0 %v1177_v55 }
 0x3c3   :  { %1055 = vmatprep.subr.bf16.mxu0 %v1178_v56 }
 0x3c6   :  { %1056 = vmatpush3.bf16.msra.mxu0 %v1179_v57 }
 0x3c7   :  { %1057 = vmatprep.subr.bf16.mxu0 %v1180_v58 }
 0x3ca   :  { %1058 = vmatpush3.bf16.msra.mxu0 %v1181_v59 }
 0x3cb   :  { %1059 = vmatprep.subr.bf16.mxu0 %v1182_v60 }
 0x3ce   :  { %1060 = vmatpush3.bf16.msra.mxu0 %v1183_v61 }
 0x3cf   :  { %1061 = vmatprep.subr.bf16.mxu0 %v1184_v62 }
 0x3d2   :  { %1062 = vmatpush3.bf16.msra.mxu0 %v1185_v63 }
 0x3d3   :  { %1063 = vmatprep.subr.bf16.mxu0 %v1186_v0 }
 0x3d6   :  { %1064 = vmatpush3.bf16.msra.mxu0 %v1187_v1 }
 0x3d7   :  { %1065 = vmatprep.subr.bf16.mxu0 %v1188_v2 }
 0x3da   :  { %1066 = vmatpush3.bf16.msra.mxu0 %v1189_v3 }
 0x47d   :  { %v702_v7 = vpop.f32.mrf.mxu0 }
 0x47e   :  { %v703_v8 = vadd.f32 %v702_v7, %v618_v5 }
 0x47f   :  { %v704_v9 = vpop.f32.mrf.mxu0 }
 0x480   :  { %v995_v10 = vmul.f32 -1.442695, %v703_v8  ;;  %v705_v11 = vadd.f32 %v704_v9, %v622_v6 }
 0x481   :  { %v706_v12 = vpop.f32.mrf.mxu0 }
 0x482   :  { %1210 = vpow2.f32 %v995_v10  ;;  %v996_v13 = vmul.f32 -1.442695, %v705_v11 }
 0x483   :  { %v707_v14 = vpop.f32.mrf.mxu0 }
 0x484   :  { %1212 = vpow2.f32 %v996_v13 }
 0x48f   :  { %v1211_v15 = vpop.eup %1210 }
 0x490   :  { %v715_v16 = vadd.f32 1.0, %v1211_v15 }
 0x491   :  { %v1213_v17 = vpop.eup %1212 }
 0x492   :  { %v716_v18 = vadd.f32 1.0, %v1213_v17  ;;  %1214 = vrcp.f32 %v715_v16 }
 0x494   :  { %1216 = vrcp.f32 %v716_v18 }
 0x49f   :  { %v1215_v37 = vpop.eup %1214 }
 0x4a0   :  { %v721_v39 = vpack.c.bf16 %v1215_v37, %v1215_v37 }
 0x4a1   :  { %v1217_v19 = vpop.eup %1216 }
 0x4a2   :  { %v722_v36 = vpack.c.bf16 %v1217_v19, %v1217_v19 }
 0x4a4   :  { %890 = vmatprep.mubr.bf16.mxu0 %v722_v36 }
 0x4a5   :  { %891 = vmatmul.mubr.bf16.vlgmr.msra.gmra.mxu0 %v721_v39 }
 0x4a6   :  { %1233 = shalt.err (!%p1230_p4)
}
 0x4a7   :  { %914 = dma.vmem_to_hbm [thread:$0]  %s912_s11, 128, %s1606_s13, [#allocation3]   ;;  %v997_v21 = vld [vmem:[%s1605_s12] ss:$0 sm:$0xff] }
 0x4a8   :  { %s1270_s19 = smov [#allocation4]  }
 0x4a9   :  { %s921_s5 = sshll.u32 %s1270_s19, 4  ;;  %s922_s5 = int_to_ptr.vmem [resolvable:$true] %s921_s5 }
 0x4aa   :  { %s1242_s13 = scalar_lea.vmem %s922_s5, 128  ;;  %p1247_p6 = scmp.lt.s32.totalorder %s922_s5, %s922_s5 }
 0x4ab   :  { %p1243_p5 = scmp.ne.s32.totalorder %s922_s5, %s1242_s13  ;;  %p1248_p7 = scmp.lt.s32.totalorder %s1242_s13, %s1242_s13 }
 0x4ad   :  { %p1249_p8 = por %p1248_p7, %p1247_p6 }
 0x4af   :  { %p1250_p9 = pnand %p1249_p8, %p1243_p5 }
 0x565   :  { %v1067_v20 = vpop.f32.mrf.mxu0 }
 0x567   :  { %v1068_v22 = vpop.f32.mrf.mxu0 }
 0x568   :  { %v1069_v23 = vadd.f32 %v1068_v22, %v1067_v20 }
 0x569   :  { %v1070_v24 = vpop.f32.mrf.mxu0 }
 0x56a   :  { %v893_v25 = vadd.f32 %v1069_v23, %v997_v21 }
 0x56b   :  { %v1071_v26 = vpop.f32.mrf.mxu0 }
 0x56c   :  { %v1014_v27 = vmul.f32 -1.442695, %v893_v25 }
 0x56e   :  { %1218 = vpow2.f32 %v1014_v27 }
 0x57b   :  { %v1219_v28 = vpop.eup %1218 }
 0x57c   :  { %v901_v29 = vadd.f32 1.0, %v1219_v28 }
 0x57e   :  { %1220 = vrcp.f32 %v901_v29 }
 0x58b   :  { %v1221_v30 = vpop.eup %1220 }
 0x58c   :  { %904 = vst [vmem:[#allocation4] sm:$0xff] %v1221_v30 }
 0x58d   :  { %1253 = shalt.err (!%p1250_p9)
}
 0x58e   :  { %924 = dma.vmem_to_hbm [thread:$0]  %s922_s5, 128, %s1607_s14, [#allocation5]  }
 0x58f   :  { %1262 = dma.done.wait [#allocation3], 128  }
 0x590   :  { %1263 = vsyncadd [#allocation3], 4294967168 }
 0x591   :  { %1264 = dma.done.wait [#allocation5], 128  }
 0x592   :  { %1265 = vsyncadd [#allocation5], 4294967168 }
 0x593   :  { %931 = vsyncpa [#allocation3], 1 }
 0x594   :  { %932 = vsyncpa [#allocation5], 1 }

</bundles_post_ra>
